<compile_context>
chip_gen: v6e
topology: v6e:2x2x1
jax: 0.10.0
libtpu: 0.0.40
codegen_flags: <defaults>
</compile_context>

<pallas_src>
import functools

import jax
import jax.numpy as jnp
from jax import lax
from jax.experimental import pallas as pl
from jax.experimental.pallas import tpu as pltpu


# ----------------------------------------------------------------------------
# Sublane-dense path: H*W % 128 == 0.  Blocks are (C, rows_tile, 128).
# ----------------------------------------------------------------------------
def _ce_kernel_rows(pred_ref, lbl_ref, out_ref, *, total_rows, rows_tile):
    """pred_ref: (C, R, 128) logits; lbl_ref: (R, 128) int32 labels;
    out_ref: (1, 1, 8, 128) per-block partial sums (row 0 holds lane partials)."""
    b = pl.program_id(1)

    x = pred_ref[...].astype(jnp.float32)                         # (C, R, 128)
    lbl = lbl_ref[...]                                            # (R, 128) int32
    C, R, L = x.shape

    # Target-class logit: compare class-iota against the label plane (one
    # select+add pass per class slice; no dense-target argmax dance).
    ci = lax.broadcasted_iota(jnp.int32, (C, R, L), 0)
    picked = jnp.sum(jnp.where(ci == lbl[None], x, 0.0), axis=0)  # (R, 128)

    # Stable log-sum-exp over classes.  All reductions are over the leading C
    # axis -> pure elementwise VPU passes on fully-populated (R,128) tiles.
    m = jnp.max(x, axis=0)                                        # (R, 128)
    lse = m + jnp.log(jnp.sum(jnp.exp(x - m[None]), axis=0))      # (R, 128)

    # Ragged last block: mask invalid rows.  A select is sufficient (no pre-mask
    # of x needed) because every reduction above is per-(row, lane).
    row = lax.broadcasted_iota(jnp.int32, (R, L), 0) + b * rows_tile
    loss = jnp.where(row < total_rows, lse - picked, 0.0)         # (R, 128)

    # Per-block partial: lane partial sums embedded in row 0 of an (8,128) tile
    # so the output block stays (8,128)-aligned -> plain lane-dense store.
    ls = jnp.sum(loss, axis=0, keepdims=True)                     # (1, 128)
    r8 = lax.broadcasted_iota(jnp.int32, (8, L), 0)
    out_ref[0, 0] = jnp.where(r8 == 0, ls, 0.0)                   # (8, 128)


def _ce_rows_path(prediction, labels, N, C, HW, M, elem_bytes, max_block_bytes):
    total_rows = HW // 128
    p4 = prediction.reshape(N, C, total_rows, 128)      # free reshape, no transpose
    l3 = labels.reshape(N, total_rows, 128)

    # Target ~max_block_bytes per prediction block (dtype-aware).
    rows_budget = max(1, max_block_bytes // (C * 128 * elem_bytes))
    if total_rows <= rows_budget:
        rows_tile = total_rows
    else:
        rows_tile = min(total_rows, max(8, (rows_budget // 8) * 8))
    # Make sure multi-TensorCore chips (v7x) get a few parallel grid steps.
    while N * pl.cdiv(total_rows, rows_tile) < 4 and rows_tile >= 16:
        rows_tile = max(8, ((rows_tile // 2) + 7) // 8 * 8)
    num_blocks = pl.cdiv(total_rows, rows_tile)

    kernel = functools.partial(_ce_kernel_rows,
                               total_rows=total_rows, rows_tile=rows_tile)

    partials = pl.pallas_call(
        kernel,
        out_shape=jax.ShapeDtypeStruct((N, num_blocks, 8, 128), jnp.float32),
        grid_spec=pltpu.PrefetchScalarGridSpec(
            num_scalar_prefetch=0,
            grid=(N, num_blocks),
            in_specs=[
                pl.BlockSpec((None, C, rows_tile, 128), lambda n, b: (n, 0, b, 0)),
                pl.BlockSpec((None, rows_tile, 128), lambda n, b: (n, b, 0)),
            ],
            out_specs=pl.BlockSpec((1, 1, 8, 128), lambda n, b: (n, b, 0, 0)),
        ),
        compiler_params=pltpu.CompilerParams(
            dimension_semantics=("parallel", "parallel"),
            vmem_limit_bytes=32 * 1024 * 1024,
        ),
    )(p4, l3)

    return jnp.sum(partials) / jnp.float32(M)


# ----------------------------------------------------------------------------
# Lane-dense fallback: H*W not a multiple of 128.  Blocks are (C, tile_s).
# ----------------------------------------------------------------------------
def _ce_kernel_lanes(pred_ref, lbl_ref, loss_ref, *, hw, tile_s):
    """pred_ref: (C, TS) logits; lbl_ref: (1, TS) int32; loss_ref: (1, TS) per-pixel loss."""
    s = pl.program_id(1)

    x = pred_ref[...].astype(jnp.float32)                         # (C, TS)
    lbl = lbl_ref[...]                                            # (1, TS)
    C, TS = x.shape

    ci = lax.broadcasted_iota(jnp.int32, (C, TS), 0)
    picked = jnp.sum(jnp.where(ci == lbl, x, 0.0),
                     axis=0, keepdims=True)                       # (1, TS)

    m = jnp.max(x, axis=0, keepdims=True)                         # (1, TS)
    lse = m + jnp.log(jnp.sum(jnp.exp(x - m), axis=0, keepdims=True))

    col = lax.broadcasted_iota(jnp.int32, (1, TS), 1) + s * tile_s
    loss_ref[...] = jnp.where(col < hw, lse - picked, 0.0)        # (1, TS)


def _ce_lanes_path(prediction, labels, N, C, HW, M, elem_bytes, max_block_bytes):
    p3 = prediction.reshape(N, C, HW)
    l3 = labels.reshape(N, 1, HW)

    max_tile = max(128, ((max_block_bytes // (C * elem_bytes)) // 128) * 128)
    tile_s = HW if HW <= max_tile else max_tile
    num_s = pl.cdiv(HW, tile_s)

    kernel = functools.partial(_ce_kernel_lanes, hw=HW, tile_s=tile_s)

    per_pixel = pl.pallas_call(
        kernel,
        out_shape=jax.ShapeDtypeStruct((N, 1, HW), jnp.float32),
        grid_spec=pltpu.PrefetchScalarGridSpec(
            num_scalar_prefetch=0,
            grid=(N, num_s),
            in_specs=[
                pl.BlockSpec((None, C, tile_s), lambda n, s: (n, 0, s)),
                pl.BlockSpec((None, 1, tile_s), lambda n, s: (n, 0, s)),
            ],
            out_specs=pl.BlockSpec((None, 1, tile_s), lambda n, s: (n, 0, s)),
        ),
        compiler_params=pltpu.CompilerParams(
            dimension_semantics=("parallel", "parallel"),
            vmem_limit_bytes=32 * 1024 * 1024,
        ),
    )(p3, l3)

    return jnp.sum(per_pixel) / jnp.float32(M)


# ----------------------------------------------------------------------------
# Public wrapper — matches CrossEntropy4D.forward(prediction, target).
# ----------------------------------------------------------------------------
def cross_entropy_4d(prediction, target, *, max_block_bytes=2 * 1024 * 1024):
    """prediction, target: (N, C, H, W).  Returns scalar mean cross-entropy (f32).

    Matches nn.CrossEntropyLoss()(prediction.permute(0,2,3,1).reshape(-1,C),
                                  target.permute(0,2,3,1).reshape(-1,C).argmax(1)).
    """
    N, C, H, W = prediction.shape
    HW = H * W
    M = N * HW

    # Read the dense target exactly once, outside the kernel: per-pixel labels.
    # (torch.argmax and jnp.argmax both return the first maximal index.)
    labels = jnp.argmax(target, axis=1).astype(jnp.int32)         # (N, H, W)

    elem_bytes = prediction.dtype.itemsize

    if HW % 128 == 0:
        return _ce_rows_path(prediction, labels, N, C, HW, M,
                             elem_bytes, max_block_bytes)
    return _ce_lanes_path(prediction, labels, N, C, HW, M,
                          elem_bytes, max_block_bytes)


def _reference_loss(prediction, target):
    """Pure-JAX reference matching nn.CrossEntropyLoss(mean) on argmax(target)."""
    N, C, H, W = prediction.shape
    p2d = jnp.transpose(prediction, (0, 2, 3, 1)).reshape(-1, C).astype(jnp.float32)
    t2d = jnp.transpose(target, (0, 2, 3, 1)).reshape(-1, C)
    lab = jnp.argmax(t2d, axis=1)
    logp = jax.nn.log_softmax(p2d, axis=-1)
    return -jnp.mean(jnp.take_along_axis(logp, lab[:, None], axis=1)[:, 0])


if __name__ == "__main__":
    key = jax.random.PRNGKey(0)
    k1, k2, k3, k4 = jax.random.split(key, 4)

    # Primary shape: exercises the sublane-dense path (H*W multiple of 128).
    N, C, H, W = 2, 4, 16, 16
    prediction = jax.random.normal(k1, (N, C, H, W), dtype=jnp.float32)
    lab = jax.random.randint(k2, (N, H, W), 0, C)
    target = jnp.transpose(jax.nn.one_hot(lab, C, dtype=jnp.float32), (0, 3, 1, 2))

    loss = jax.block_until_ready(cross_entropy_4d(prediction, target))
    ref = jax.block_until_ready(_reference_loss(prediction, target))
    assert jnp.allclose(loss, ref, atol=1e-5, rtol=1e-5), (loss, ref)

    # Secondary shape: exercises the lane-dense fallback (H*W not multiple of 128).
    N2, C2, H2, W2 = 2, 4, 10, 10
    pred2 = jax.random.normal(k3, (N2, C2, H2, W2), dtype=jnp.float32)
    lab2 = jax.random.randint(k4, (N2, H2, W2), 0, C2)
    tgt2 = jnp.transpose(jax.nn.one_hot(lab2, C2, dtype=jnp.float32), (0, 3, 1, 2))

    loss2 = jax.block_until_ready(cross_entropy_4d(pred2, tgt2))
    ref2 = jax.block_until_ready(_reference_loss(pred2, tgt2))
    assert jnp.allclose(loss2, ref2, atol=1e-5, rtol=1e-5), (loss2, ref2)

    print("KERNEL_OK")
</pallas_src>

<mosaic_0001>
module attributes {stable_mosaic.version = 11 : i64} {
  func.func @_ce_kernel_rows(%arg0: i32, %arg1: i32, %arg2: memref<1x4x2x128xf32, #tpu.memory_space<vmem>>, %arg3: memref<1x2x128xi32, #tpu.memory_space<vmem>>, %arg4: memref<1x1x8x128xf32, #tpu.memory_space<vmem>>) attributes {dimension_semantics = [#tpu.dimension_semantics<parallel>, #tpu.dimension_semantics<parallel>], iteration_bounds = array<i64: 2, 1>, scalar_prefetch = 0 : i64, scratch_operands = 0 : i64, tpu.core_type = #tpu.core_type<tc>, window_params = [{transform_indices = @transform_0, window_bounds = array<i64: 1, 4, 2, 128>}, {transform_indices = @transform_1, window_bounds = array<i64: 1, 2, 128>}, {transform_indices = @transform_2, window_bounds = array<i64: 1, 1, 8, 128>}]} {
    %c0 = arith.constant 0 : index
    %c0_0 = arith.constant 0 : index
    %c0_1 = arith.constant 0 : index
    %c0_2 = arith.constant 0 : index
    %0 = vector.load %arg2[%c0, %c0_0, %c0_1, %c0_2] : memref<1x4x2x128xf32, #tpu.memory_space<vmem>>, vector<1x4x2x128xf32>
    %1 = vector.shape_cast %0 : vector<1x4x2x128xf32> to vector<4x2x128xf32>
    %c0_3 = arith.constant 0 : index
    %c0_4 = arith.constant 0 : index
    %c0_5 = arith.constant 0 : index
    %2 = vector.load %arg3[%c0_3, %c0_4, %c0_5] : memref<1x2x128xi32, #tpu.memory_space<vmem>>, vector<1x2x128xi32>
    %3 = vector.shape_cast %2 : vector<1x2x128xi32> to vector<2x128xi32>
    %4 = tpu.iota {dimensions = array<i32: 0>} : vector<4x2x128xi32>
    %5 = vector.shape_cast %3 : vector<2x128xi32> to vector<1x2x128xi32>
    %6 = vector.broadcast %5 : vector<1x2x128xi32> to vector<4x2x128xi32>
    %7 = arith.cmpi eq, %4, %6 : vector<4x2x128xi32>
    %cst = arith.constant 0.000000e+00 : f32
    %8 = vector.broadcast %cst : f32 to vector<4x2x128xf32>
    %9 = arith.select %7, %1, %8 : vector<4x2x128xi1>, vector<4x2x128xf32>
    %cst_6 = arith.constant dense<0.000000e+00> : vector<2x128xf32>
    %10 = vector.multi_reduction <add>, %9, %cst_6 [0] : vector<4x2x128xf32> to vector<2x128xf32>
    %cst_7 = arith.constant dense<0xFF800000> : vector<2x128xf32>
    %11 = vector.multi_reduction <maximumf>, %1, %cst_7 [0] : vector<4x2x128xf32> to vector<2x128xf32>
    %12 = vector.shape_cast %11 : vector<2x128xf32> to vector<1x2x128xf32>
    %13 = vector.broadcast %12 : vector<1x2x128xf32> to vector<4x2x128xf32>
    %14 = arith.subf %1, %13 : vector<4x2x128xf32>
    %15 = math.exp %14 : vector<4x2x128xf32>
    %cst_8 = arith.constant dense<0.000000e+00> : vector<2x128xf32>
    %16 = vector.multi_reduction <add>, %15, %cst_8 [0] : vector<4x2x128xf32> to vector<2x128xf32>
    %17 = math.log %16 : vector<2x128xf32>
    %18 = arith.addf %11, %17 : vector<2x128xf32>
    %19 = tpu.iota {dimensions = array<i32: 0>} : vector<2x128xi32>
    %c2_i32 = arith.constant 2 : i32
    %20 = arith.muli %arg1, %c2_i32 : i32
    %21 = vector.broadcast %20 : i32 to vector<2x128xi32>
    %22 = arith.addi %19, %21 : vector<2x128xi32>
    %c2_i32_9 = arith.constant 2 : i32
    %23 = vector.broadcast %c2_i32_9 : i32 to vector<2x128xi32>
    %24 = arith.cmpi slt, %22, %23 : vector<2x128xi32>
    %25 = arith.subf %18, %10 : vector<2x128xf32>
    %cst_10 = arith.constant 0.000000e+00 : f32
    %26 = vector.broadcast %cst_10 : f32 to vector<2x128xf32>
    %27 = arith.select %24, %25, %26 : vector<2x128xi1>, vector<2x128xf32>
    %cst_11 = arith.constant dense<0.000000e+00> : vector<128xf32>
    %28 = vector.multi_reduction <add>, %27, %cst_11 [0] : vector<2x128xf32> to vector<128xf32>
    %29 = vector.shape_cast %28 : vector<128xf32> to vector<1x128xf32>
    %30 = tpu.iota {dimensions = array<i32: 0>} : vector<8x128xi32>
    %c0_i32 = arith.constant 0 : i32
    %31 = vector.broadcast %c0_i32 : i32 to vector<8x128xi32>
    %32 = arith.cmpi eq, %30, %31 : vector<8x128xi32>
    %cst_12 = arith.constant 0.000000e+00 : f32
    %33 = vector.shape_cast %29 : vector<1x128xf32> to vector<1x128xf32>
    %34 = vector.broadcast %33 : vector<1x128xf32> to vector<8x128xf32>
    %35 = vector.broadcast %cst_12 : f32 to vector<8x128xf32>
    %36 = arith.select %32, %34, %35 : vector<8x128xi1>, vector<8x128xf32>
    %c0_13 = arith.constant 0 : index
    %c0_14 = arith.constant 0 : index
    %c0_15 = arith.constant 0 : index
    %c0_16 = arith.constant 0 : index
    %37 = vector.load %arg4[%c0_13, %c0_14, %c0_15, %c0_16] : memref<1x1x8x128xf32, #tpu.memory_space<vmem>>, vector<1x1x8x128xf32>
    %38 = vector.shape_cast %37 : vector<1x1x8x128xf32> to vector<8x128xf32>
    %39 = vector.shape_cast %36 : vector<8x128xf32> to vector<1x1x8x128xf32>
    tpu.vector_store %arg4[%c0_13, %c0_14, %c0_15, %c0_16], %39 {strides = array<i32>} : memref<1x1x8x128xf32, #tpu.memory_space<vmem>>, vector<1x1x8x128xf32>,
    return
  }
  func.func @transform_0(%arg0: i32, %arg1: i32) -> (i32, i32, i32, i32) {
    %c0_i32 = arith.constant 0 : i32
    %c0_i32_0 = arith.constant 0 : i32
    %c0_i32_1 = arith.constant 0 : i32
    return %arg0, %c0_i32, %arg1, %c0_i32_0 : i32, i32, i32, i32
  }
  func.func @transform_1(%arg0: i32, %arg1: i32) -> (i32, i32, i32) {
    %c0_i32 = arith.constant 0 : i32
    %c0_i32_0 = arith.constant 0 : i32
    return %arg0, %arg1, %c0_i32 : i32, i32, i32
  }
  func.func @transform_2(%arg0: i32, %arg1: i32) -> (i32, i32, i32, i32) {
    %c0_i32 = arith.constant 0 : i32
    %c0_i32_0 = arith.constant 0 : i32
    %c0_i32_1 = arith.constant 0 : i32
    return %arg0, %arg1, %c0_i32, %c0_i32_0 : i32, i32, i32, i32
  }
}

</mosaic_0001>

<bundles_post_ra>
// kernel: tpu_custom_call.1
= control target key start
LH: loop header
LB: loop body
LE: loop exit
PB: predicated region body
PF: predicated region fallthrough
CT: control target
= control target key end

     0   :  { %7 = vsyncpa [#allocation3], 0  ;;  %s854_s0 = inlined_call_operand.hbm [shape: f32[2,4,2,128], index: 0, kind: input, shape index: {}]   ;;  %s855_s1 = inlined_call_operand.hbm [shape: s32[2,2,128], index: 1, kind: input, shape index: {}]   ;;  %s856_s2 = inlined_call_operand.hbm [shape: f32[2,1,8,128], index: 2, kind: output, shape index: {}]  }
   0x1   :  { %9 = vsyncpa [#allocation3 + $0x1], 0 }
   0x2   :  { %10 = vsyncpa [#allocation6], 0 }
   0x3   :  { %12 = vsyncpa [#allocation6 + $0x1], 0 }
   0x4   :  { %13 = vsyncpa [#allocation4], 0 }
   0x5   :  { %15 = vsyncpa [#allocation4 + $0x1], 0  ;;  %s666_s9 = smov 0   ;;  %s668_s10 = smov 0  }
   0x6   :  { %s670_s11 = smov 0   ;;  %s672_s12 = smov 0  }
   0x7   :  { %s674_s13 = smov 0   ;;  %s676_s14 = smov 0  }
   0x8 LB: > { %s407_s15 = sadd.s32 4294967295, %s644_s14   ;;  %s408_s16 = sadd.s32 4294967294, %s644_s14   ;;  %s644_s14 = sphi %s676_s14, %s21_s14   ;;  %s640_s13 = sphi %s674_s13, %s868_s13   ;;  %s636_s12 = sphi %s672_s12, %s867_s12   ;;  %s632_s11 = sphi %s670_s11, %s866_s11   ;;  %s628_s10 = sphi %s668_s10, %s865_s10   ;;  %s624_s9 = sphi %s666_s9, %s864_s9  }
   0x9   : > { %s33_s17 = sadd.s32 1, %s640_s13  ;;  %s42_s18 = sadd.s32 1, %s632_s11 }
   0xa   : > { %p35_p0 = scmp.ge.s32.totalorder %s33_s17, 2  ;;  %p49_p1 = scmp.ne.s32.totalorder %s632_s11, %s628_s10 }
   0xb   : > { %p50_p2 = scmp.eq.s32.totalorder %s644_s14, 0  ;;  %p55_p3 = scmp.ne.s32.totalorder %s628_s10, %s624_s9 }
   0xc   : > { %s870_s17 = smov (%p35_p0, %s33_s17), 0  ;;  %p56_p5 = scmp.eq.s32.totalorder %s407_s15, 0 }
   0xd   : > { %p707_p4 = por %p50_p2, %p49_p1  ;;  %s37_s20 = ssub.s32 %s640_s13, %s870_s17 }
   0xe   : > { %p109_p6 = scmp.eq.s32.totalorder %s407_s15, 1  ;;  %p40_p7 = scmp.eq.s32.totalorder %s37_s20, 0 }
   0xf   : > { %p713_p8 = por %p56_p5, %p55_p3  ;;  %p115_p10 = scmp.eq.s32.totalorder %s408_s16, 1 }
  0x10   : > { %p717_p9 = por %p109_p6, %p49_p1  ;;  %p442_p13 = scmp.lt.s32.totalorder %s644_s14, 2 }
  0x11   : > { %s722_s23 = scalar_select %p40_p7, %s632_s11, %s42_s18  }
  0x12   : > { %p724_p11 = por %p115_p10, %p55_p3  ;;  %s731_s25 = sand.u32 1, %s632_s11  }
  0x13   : > { %s411_s26 = sshll.u32 %s731_s25, 3  ;;  %s424_s27 = sshll.u32 %s640_s13, 7 }
  0x14   : > { %s146_s30 = scalar_lea.hbm %s854_s0, %s424_s27  ;;  %s139_s3 = scalar_lea.vmem [#allocation2], %s411_s26 }
  0x15   : > { %s147_s4 = sshll.u32 %s139_s3, 4  ;;  %p740_p0 = pnand %p442_p13, %p707_p4  ;;  %s148_s4 = int_to_ptr.vmem [resolvable:$true] %s147_s4 }
  0x16   : > { %p416_p1 = scmp.ge.s32.totalorder %s644_s14, 1  ;;  %s136_s6 = scalar_lea.sflag [#allocation3], %s731_s25 }
  0x17   : > { %p506_p2 = pneg %p740_p0  ;;  %s517_s7 = scalar_lea.vmem %s148_s4, 128 }
  0x18   : > { %p518_p3 = scmp.ne.s32.totalorder %s148_s4, %s517_s7  ;;  %s646_s8 = smov [#allocation2]  }
  0x19   : > { %s522_s15 = sshll.u32 %s646_s8, 4  ;;  %s523_s15 = int_to_ptr.vmem [resolvable:$false] %s522_s15 }
  0x1a   : > { %p520_p5 = pnand %p518_p3, %p506_p2  ;;  %s524_s16 = scalar_lea.vmem %s523_s15, 256 }
  0x1b   : > { %p525_p4 = scmp.lt.s32.totalorder %s148_s4, %s523_s15  ;;  %p526_p7 = scmp.lt.s32.totalorder %s524_s16, %s517_s7 }
  0x1c   : > { %p521_p6 = pneg %p520_p5 }
  0x1d   : > { %p527_p10 = por %p526_p7, %p525_p4 }
  0x1f   : > { %p528_p13 = pnand %p527_p10, %p521_p6 }
  0x21   : > { %531 = shalt.err (!%p528_p13)
}
  0x22   : > { %s647_s18 = smov 32   ;;  %s648_s19 = smov 2  }
  0x23   : > { %434 = dma.hbm_to_vmem [thread:$0]  (!%p740_p0), %s146_s30, 128, %s148_s4, %s136_s6, %s647_s18, %s647_s18, %s648_s19  }
  0x24   : > { %p174_p3 = scmp.lt.s32.totalorder %s644_s14, 3  ;;  %s414_s20 = sshll.u32 %s731_s25, 1 }
  0x25   : > { %s415_s26 = sshll.u32 %s640_s13, 5  ;;  %s161_s7 = scalar_lea.vmem [#allocation5], %s414_s20 }
  0x26   : > { %p758_p5 = pnand %p416_p1, %p174_p3  ;;  %s167_s3 = scalar_lea.hbm %s855_s1, %s415_s26 }
  0x27   : > { %s169_s8 = sshll.u32 %s161_s7, 4  ;;  %s158_s15 = scalar_lea.sflag [#allocation6], %s731_s25  ;;  %s170_s8 = int_to_ptr.vmem [resolvable:$true] %s169_s8 }
  0x28   : > { %s545_s16 = scalar_lea.vmem %s170_s8, 32  ;;  %s649_s30 = smov [#allocation5]  }
  0x29   : > { %p546_p6 = scmp.ne.s32.totalorder %s170_s8, %s545_s16  ;;  %s550_s4 = sshll.u32 %s649_s30, 4  ;;  %s551_s4 = int_to_ptr.vmem [resolvable:$false] %s550_s4 }
  0x2a   : > { %s552_s6 = scalar_lea.vmem %s551_s4, 64  ;;  %p553_p1 = scmp.lt.s32.totalorder %s170_s8, %s551_s4 }
  0x2b   : > { %p548_p4 = pnand %p546_p6, %p506_p2  ;;  %p554_p10 = scmp.lt.s32.totalorder %s552_s6, %s545_s16 }
  0x2d   : > { %p549_p7 = pneg %p548_p4  ;;  %p555_p13 = por %p554_p10, %p553_p1 }
  0x2f   : > { %p556_p3 = pnand %p555_p13, %p549_p7 }
  0x31   : > { %559 = shalt.err (!%p556_p3)
}
  0x32   : > { %437 = dma.hbm_to_vmem [thread:$0]  (!%p740_p0), %s167_s3, 32, %s170_s8, %s158_s15  }
  0x33   : > { %178 = sbr.rel (%p758_p5) target bundleno = 141 (0x8d), region = 28  ;;  %s774_s25 = sand.u32 (!%p758_p5), 1, %s628_s10  }
  0x34   : > { %s417_s18 = sshll.u32 (!%p758_p5), %s774_s25, 3  ;;  %s181_s19 = scalar_lea.sflag (!%p758_p5), [#allocation3], %s774_s25 }
  0x35   : > { %s184_s20 = scalar_lea.vmem (!%p758_p5), [#allocation2], %s417_s18 }
  0x38   : > { %611 = dma.done.wait (%p713_p8), %s181_s19, 128  }
  0x39   : > { %613 = vsyncadd (%p713_p8), %s181_s19, 4294967168  ;;  %s418_s5 = sshll.u32 %s774_s25, 1  ;;  %s190_s26 = scalar_lea.sflag [#allocation6], %s774_s25 }
  0x3a   : > { %s786_s27 = scalar_lea.vmem [#allocation5], %s418_s5 }
  0x3b   : > { %615 = dma.done.wait (%p713_p8), %s190_s26, 32  }
  0x3c   : > { %617 = vsyncadd (%p713_p8), %s190_s26, 4294967264  ;;  %vm232_vm0 = vcmask 1041408   ;;  %v219_v0 = vld [vmem:[%s184_s20] sm:$0x3]  ;;  %v220_v1 = vld [vmem:[%s184_s20 + $0x2] sm:$0x3]  ;;  %v269_v39 = vlaneseq }
  0x3d   : > { %v221_v2 = vld [vmem:[%s184_s20 + $0x4] sm:$0x3]  ;;  %v222_v3 = vld [vmem:[%s184_s20 + $0x6] sm:$0x3]  ;;  %v240_v4 = vsel %vm232_vm0, %v219_v0, -inf  ;;  %v241_v5 = vsel %vm232_vm0, %v220_v1, -inf }
  0x3e   : > { %v242_v6 = vsel %vm232_vm0, %v221_v2, -inf  ;;  %v243_v7 = vsel %vm232_vm0, %v222_v3, -inf  ;;  %v244_v8 = vmax.f32 %v240_v4, %v241_v5  ;;  %v223_v25 = vld [vmem:[%s786_s27] sm:$0x3]  ;;  %v270_v43 = vshrl.u32 %v269_v39, 7  ;;  %s218_s21 = scalar_lea.vmem [#allocation7], %s417_s18 }
  0x3f   : > { %v245_v9 = vmax.f32 %v242_v6, %v243_v7  ;;  %vm224_vm1 = vcmp.eq.s32.totalorder %v223_v25, 0  ;;  %vm225_vm2 = vcmp.eq.s32.totalorder %v223_v25, 1  ;;  %vm226_vm3 = vcmp.eq.s32.totalorder %v223_v25, 2  ;;  %s302_s28 = sshll.u32 %s218_s21, 4  ;;  %s421_s29 = sshll.u32 %s636_s12, 7  ;;  %s809_s28 = int_to_ptr.vmem [resolvable:$true] %s302_s28 }
  0x40   : > { %v228_v31 = vsel %vm224_vm1, %v219_v0, 0.0  ;;  %v229_v32 = vsel %vm225_vm2, %v220_v1, 0.0  ;;  %v230_v35 = vsel %vm226_vm3, %v221_v2, 0.0  ;;  %vm227_vm4 = vcmp.eq.s32.totalorder %v223_v25, 3  ;;  %s300_s8 = scalar_lea.hbm %s856_s2, %s421_s29  ;;  %s288_s15 = scalar_lea.sflag [#allocation4], %s774_s25 }
  0x41   : > { %v246_v10 = vmax.f32 %v244_v8, %v245_v9  ;;  %v233_v33 = vsel %vm232_vm0, %v228_v31, 0.0  ;;  %v234_v34 = vsel %vm232_vm0, %v229_v32, 0.0  ;;  %v236_v37 = vsel %vm232_vm0, %v230_v35, 0.0  ;;  %s560_s16 = scalar_lea.vmem %s809_s28, 128  ;;  %s650_s12 = smov [#allocation7]  }
  0x42   : > { %v235_v36 = vadd.f32 %v234_v34, %v233_v33  ;;  %v231_v38 = vsel %vm227_vm4, %v222_v3, 0.0  ;;  %vm274_vm5 = vcmp.lt.s32.totalorder %v270_v43, 2  ;;  %vm284_vm6 = vcmp.eq.s32.totalorder %v270_v43, 0  ;;  %p561_p8 = scmp.ne.s32.totalorder %s809_s28, %s560_s16  ;;  %s564_s30 = sshll.u32 %s650_s12, 4  ;;  %s565_s30 = int_to_ptr.vmem [resolvable:$false] %s564_s30 }
  0x43   : > { %v247_v11 = vsub.f32 %v219_v0, %v246_v10  ;;  %v248_v12 = vsub.f32 %v220_v1, %v246_v10  ;;  %v249_v13 = vsub.f32 %v221_v2, %v246_v10  ;;  %v250_v14 = vsub.f32 %v222_v3, %v246_v10  ;;  %s566_s4 = scalar_lea.vmem %s565_s30, 256  ;;  %p567_p5 = scmp.lt.s32.totalorder %s809_s28, %s565_s30 }
  0x44   : > { %v237_v40 = vadd.f32 %v236_v37, %v235_v36  ;;  %v238_v41 = vsel %vm232_vm0, %v231_v38, 0.0  ;;  %p562_p0 = pnand %p561_p8, %p717_p9  ;;  %p568_p6 = scmp.lt.s32.totalorder %s566_s4, %s560_s16 }
  0x45   : > { %v251_v15 = vmul.f32 1.442695, %v247_v11  ;;  %v253_v16 = vmul.f32 1.442695, %v248_v12  ;;  %v255_v17 = vmul.f32 1.442695, %v249_v13 }
  0x46   : > { %v257_v18 = vmul.f32 1.442695, %v250_v14  ;;  %v239_v44 = vadd.f32 %v238_v41, %v237_v40  ;;  %p563_p2 = pneg %p562_p0  ;;  %p569_p4 = por %p568_p6, %p567_p5 }
  0x47   : > { %494 = vpow2.f32 %v251_v15 }
  0x48   : > { %496 = vpow2.f32 %v253_v16  ;;  %p570_p7 = pnand %p569_p4, %p563_p2 }
  0x49   : > { %498 = vpow2.f32 %v255_v17 }
  0x4a   : > { %500 = vpow2.f32 %v257_v18 }
  0x54   : > { %v495_v19 = vpop.eup %494 }
  0x55   : > { %v497_v20 = vpop.eup %496  ;;  %v259_v21 = vsel %vm232_vm0, %v495_v19, 0.0 }
  0x56   : > { %v499_v22 = vpop.eup %498  ;;  %v260_v23 = vsel %vm232_vm0, %v497_v20, 0.0 }
  0x57   : > { %v501_v24 = vpop.eup %500  ;;  %v261_v26 = vadd.f32 %v260_v23, %v259_v21  ;;  %v262_v27 = vsel %vm232_vm0, %v499_v22, 0.0 }
  0x58   : > { %v264_v28 = vsel %vm232_vm0, %v501_v24, 0.0 }
  0x59   : > { %v263_v29 = vadd.f32 %v262_v27, %v261_v26 }
  0x5b   : > { %v265_v30 = vadd.f32 %v264_v28, %v263_v29 }
  0x5d   : > { %502 = vlog2.f32 %v265_v30 }
  0x6a   : > { %v503_v42 = vpop.eup %502 }
  0x6b   : > { %v267_v45 = vmul.f32 0.6931472, %v503_v42 }
  0x6d   : > { %v268_v46 = vadd.f32 %v267_v45, %v246_v10 }
  0x6f   : > { %v275_v47 = vsub.f32 %v268_v46, %v239_v44 }
  0x71   : > { %v276_v48 = vsel %vm274_vm5, %v275_v47, 0.0 }
  0x72   : > { %v277_v49 = vsel %vm232_vm0, %v276_v48, 0.0 }
  0x73   : > { %v278_v50 = vrot.slane %v277_v49, 4 }
  0x75   : > { %v279_v51 = vadd.f32 %v278_v50, %v277_v49 }
  0x77   : > { %v280_v52 = vrot.slane %v279_v51, 2 }
  0x79   : > { %v281_v53 = vadd.f32 %v280_v52, %v279_v51 }
  0x7b   : > { %v282_v54 = vrot.slane %v281_v53, 1 }
  0x7d   : > { %v283_v55 = vadd.f32 %v282_v54, %v281_v53 }
  0x7f   : > { %v285_v56 = vsel %vm284_vm6, %v283_v55, 0.0 }
  0x80   : > { %286 = vst [vmem:[%s218_s21] sm:$0xff] %v285_v56 }
  0x81   : > { %573 = shalt.err (!%p570_p7)
}
  0x82   : > { %s574_s6 = scalar_lea.hbm %s300_s8, 128  ;;  %s578_s19 = scalar_lea.hbm %s856_s2, 256 }
  0x83   : > { %p575_p1 = scmp.ne.s32.totalorder %s300_s8, %s574_s6  ;;  %p579_p3 = scmp.lt.s32.totalorder %s300_s8, %s856_s2 }
  0x84   : > { %p580_p8 = scmp.lt.s32.totalorder %s578_s19, %s574_s6 }
  0x85   : > { %p576_p10 = pnand %p575_p1, %p717_p9 }
  0x86   : > { %p581_p0 = por %p580_p8, %p579_p3 }
  0x87   : > { %p577_p13 = pneg %p576_p10 }
  0x89   : > { %p582_p12 = pnand %p581_p0, %p577_p13 }
  0x8b   : > { %585 = shalt.err (!%p582_p12)
}
  0x8c   : > { %429 = dma.vmem_to_hbm [thread:$0]  (%p717_p9), %s809_s28, 128, %s300_s8, %s288_s15  }
  0x8d PF: > { %s314_s26 = sand.u32 1, %s624_s9   ;;  %p863_p2 = scmp.ge.s32.totalorder %s644_s14, 2 }
  0x8e   : > { %s315_s27 = scalar_lea.sflag [#allocation4], %s314_s26 }
  0x8f   : > { %p439_p5 = pnand %p863_p2, %p724_p11 }
  0x91   : > { %p440_p6 = pneg %p439_p5 }
  0x93   : > { %619 = dma.done.wait (%p440_p6), %s315_s27, 128  }
  0x94   : > { %621 = vsyncadd (%p440_p6), %s315_s27, 4294967168  ;;  %s21_s14 = sadd.s32 1, %s644_s14   ;;  %s864_s9 = smov %s628_s10 }
  0x95   : > { %p18_p4 = scmp.ge.s32.totalorder %s21_s14, 4   ;;  %s865_s10 = smov %s632_s11 }
  0x96   : > { %s866_s11 = smov %s722_s23  ;;  %s867_s12 = smov %s640_s13 }
  0x97   : > { %s868_s13 = smov %s870_s17  ;;  %20 = sbr.rel (!%p18_p4) target bundleno = 8 (0x8), region = 86 }
  0x9c   :  { %320 = vsyncpa [#allocation3], 1 }
  0x9d   :  { %322 = vsyncpa [#allocation3 + $0x1], 1 }
  0x9e   :  { %323 = vsyncpa [#allocation6], 1 }
  0x9f   :  { %325 = vsyncpa [#allocation6 + $0x1], 1 }
  0xa0   :  { %326 = vsyncpa [#allocation4], 1 }
  0xa1   :  { %328 = vsyncpa [#allocation4 + $0x1], 1 }

</bundles_post_ra>
